<compile_context>
chip_gen: v5e
topology: v5e:2x2
jax: 0.10.0
libtpu: 0.0.40
codegen_flags: <defaults>
</compile_context>

<pallas_src>
import functools

import jax
import jax.numpy as jnp
from jax.experimental import pallas as pl
from jax.experimental.pallas import tpu as pltpu

_LANE = 128
# Matched pairs (lane axis) per grid step.  8192 lanes -> ~4 MB double-buffered
# per step, far below scoped VMEM on every generation, so typical M is always a
# single tile; multi-tile accumulation only kicks in for extreme M.
_TM_MAX = 8192


def _next_pow2(x):
    x = int(x)
    if x <= 1:
        return 1
    return 1 << (x - 1).bit_length()


def _oks_loss_kernel(params_ref, slab_ref, scale_ref, inv2var_ref,
                     out_ref, acc_ref, tot_ref, *, eps, weight):
    """One M-tile of the OKS loss.

    params_ref  : [1]         f32 SMEM   (1 / true_M)
    slab_ref    : [5, K, TM]  f32 VMEM   planes (pred_x, pred_y, tgt_x, tgt_y, vis)
    scale_ref   : [1, TM]     f32 VMEM   target areas (optionally * 0.53), zero-padded
    inv2var_ref : [K, 1]      f32 VMEM   1 / (2 * (2 * sigma)^2)
    out_ref     : [1]         f32 SMEM   scalar loss (written on the last step)
    acc_ref     : [1, TM]     f32 VMEM   lane-wise running sum of per-instance oks
    tot_ref     : [1, 1]      f32 VMEM   staging slot for the final scalar
    """
    step = pl.program_id(0)

    @pl.when(step == 0)
    def _init():
        acc_ref[...] = jnp.zeros_like(acc_ref)

    px = slab_ref[0]
    py = slab_ref[1]
    tx = slab_ref[2]
    ty = slab_ref[3]
    vis = slab_ref[4]

    dx = px - tx
    dy = py - ty
    d_square = dx * dx + dy * dy                                    # [K, TM]

    # ONE approx (EUP) reciprocal on the [1, TM] scale term; the per-keypoint
    # 1/(2*(2*sigma)^2) factor arrives precomputed.  Effective denominator is
    # 2*var*(scale + eps) (vs reference 2*scale*var + eps) -- O(eps) shift,
    # and it keeps padded lanes (scale == 0) finite.
    inv_scale = pl.reciprocal(scale_ref[...] + eps, approx=True)    # [1, TM]
    oks = jnp.exp(-d_square * inv2var_ref[...] * inv_scale)         # [K, TM]

    num = jnp.sum(oks * vis, axis=0, keepdims=True)                 # [1, TM]
    den = jnp.sum(vis, axis=0, keepdims=True) + eps                 # [1, TM]
    # Exact divide (cheap at [1, TM]) -- tightens accuracy per review.
    # Padded lanes have vis == 0 -> num == 0 -> contribute exactly 0.
    acc_ref[...] += num / den                                        # lane-wise

    @pl.when(step == pl.num_programs(0) - 1)
    def _finalize():
        total = jnp.sum(acc_ref[...], axis=1, keepdims=True)         # [1, 1]
        tot_ref[...] = (1.0 - total * params_ref[0]) * weight
        out_ref[0] = tot_ref[0, 0]


def oks_loss(predictions, targets, src_ids, tgt_ids, *, use_bbox=False,
             weight=1.0, eps=1e-5):
    """JAX/Pallas equivalent of OksLoss.forward."""
    pred_joints_all = predictions["joints_refine"]          # [B, Q, K, 2]
    target_joints_all = targets["joints"]                    # [N_tgt, K, 2]
    target_areas_all = targets["areas"]                      # [N_tgt]
    visible_flags_all = targets["visible_flags"]             # [N_tgt, K]
    sigmas = targets["sigmas"]                               # [K]

    # Gather matched pairs (glue / pure indexing).
    pred_joints = pred_joints_all[src_ids]                   # [M, K, 2]
    target_joints = target_joints_all[tgt_ids]               # [M, K, 2]
    target_areas = target_areas_all[tgt_ids]                 # [M]
    visible_flags = visible_flags_all[tgt_ids]                # [M, K]

    M, K = visible_flags.shape

    if M == 0:
        # Reference dummy path: mean(|pred[0,0]| * 0) == 0 exactly.
        dummy = jnp.abs(pred_joints_all[0, 0].astype(jnp.float32)) * 0.0
        return jnp.mean(dummy) * jnp.float32(weight)

    f32 = jnp.float32
    scales = (target_areas.astype(f32) * 0.53 if use_bbox
              else target_areas.astype(f32))

    # Power-of-two lane bucket (>= 128): bounds distinct compiled programs to
    # O(log M); the true M only enters through the runtime 1/M scalar below.
    m_pad = max(_LANE, _next_pow2(M))
    tm = min(_TM_MAX, m_pad)
    num_tiles = m_pad // tm          # both powers of two -> exact
    pad = m_pad - M

    # Build the [5, K, M_pad] lane-dense slab without materializing a fused
    # [M, K, 5] intermediate: per-tensor transposes + a major-axis concat.
    # Padded lanes are all-zero (in particular vis == 0) -> exact 0 contribution.
    pj = jnp.transpose(pred_joints.astype(f32), (2, 1, 0))        # [2, K, M]
    tj = jnp.transpose(target_joints.astype(f32), (2, 1, 0))      # [2, K, M]
    vf = jnp.transpose(visible_flags.astype(f32), (1, 0))[None]   # [1, K, M]
    slab = jnp.concatenate([pj, tj, vf], axis=0)                   # [5, K, M]
    slab = jnp.pad(slab, ((0, 0), (0, 0), (0, pad)))               # [5, K, M_pad]

    scales2d = jnp.pad(scales.reshape(1, M), ((0, 0), (0, pad)))   # [1, M_pad]
    # Host-side per-keypoint factor (assumes sigmas > 0, true for OKS sigmas).
    inv_two_var = (1.0 / (2.0 * jnp.square(sigmas.astype(f32) * 2.0))
                   ).reshape(K, 1)                                  # [K, 1]

    # Runtime scalar: 1 / true_M, read from SMEM so the kernel program does
    # not depend on the exact M (only on the bucketed m_pad / tm).
    params = jnp.full((1,), 1.0 / float(M), dtype=f32)

    kernel = functools.partial(_oks_loss_kernel, eps=float(eps),
                               weight=float(weight))

    out = pl.pallas_call(
        kernel,
        out_shape=jax.ShapeDtypeStruct((1,), jnp.float32),
        grid_spec=pltpu.PrefetchScalarGridSpec(
            num_scalar_prefetch=0,
            grid=(num_tiles,),
            in_specs=[
                pl.BlockSpec(memory_space=pltpu.MemorySpace.SMEM),   # params
                pl.BlockSpec((5, K, tm), lambda i: (0, 0, i)),       # slab
                pl.BlockSpec((1, tm), lambda i: (0, i)),             # scales
                pl.BlockSpec((K, 1), lambda i: (0, 0)),              # inv_two_var
            ],
            out_specs=pl.BlockSpec(memory_space=pltpu.MemorySpace.SMEM),
            scratch_shapes=[
                pltpu.VMEM((1, tm), jnp.float32),   # lane-wise accumulator
                pltpu.VMEM((1, 1), jnp.float32),    # final scalar staging
            ],
        ),
        compiler_params=pltpu.CompilerParams(
            dimension_semantics=("arbitrary",)),
    )(params, slab, scales2d, inv_two_var)
    return out[0]


def _reference_oks_loss(predictions, targets, src_ids, tgt_ids, *,
                        use_bbox=False, weight=1.0, eps=1e-5):
    """Pure-JAX reference mirroring the PyTorch forward (sanity check)."""
    pj = predictions["joints_refine"][src_ids]
    tj = targets["joints"][tgt_ids]
    ta = targets["areas"][tgt_ids]
    vf = targets["visible_flags"][tgt_ids]
    sig = targets["sigmas"]
    scales = ta * 0.53 if use_bbox else ta
    var = (sig * 2.0) ** 2
    d2 = jnp.sum(jnp.square(pj - tj), axis=-1)
    oks = jnp.exp(-d2 / (2 * scales[:, None] * var[None, :] + eps))
    oks = jnp.sum(oks * vf, axis=-1) / (jnp.sum(vf, axis=-1) + eps)
    return (1.0 - jnp.mean(oks)) * weight


def _make_case(B, Q, K, n_tgt, M, key):
    k = jax.random.split(key, 8)
    joints_refine = jax.random.normal(k[0], (B, Q, K, 2), jnp.float32) * 0.1
    target_joints = jax.random.normal(k[1], (n_tgt, K, 2), jnp.float32) * 0.1
    target_areas = jax.random.uniform(k[2], (n_tgt,), jnp.float32,
                                      minval=0.5, maxval=2.0)
    visible_flags = (jax.random.uniform(k[3], (n_tgt, K)) > 0.3).astype(jnp.float32)
    sigmas = jax.random.uniform(k[4], (K,), jnp.float32, minval=0.1, maxval=0.3)
    src_batch = jax.random.randint(k[5], (M,), 0, B).astype(jnp.int32)
    src_query = jax.random.randint(k[6], (M,), 0, Q).astype(jnp.int32)
    tgt_ids = jax.random.randint(k[7], (M,), 0, n_tgt).astype(jnp.int32)
    predictions = {"joints_refine": joints_refine}
    targets = {"joints": target_joints, "areas": target_areas,
               "visible_flags": visible_flags, "sigmas": sigmas}
    return predictions, targets, (src_batch, src_query), tgt_ids


if __name__ == "__main__":
    key1, key2, key3 = jax.random.split(jax.random.PRNGKey(0), 3)

    # Case 1: small shapes (typical per-image sizes), single 128-lane tile.
    preds, tgts, src_ids, tgt_ids = _make_case(B=2, Q=8, K=17, n_tgt=6, M=5,
                                               key=key1)
    loss = oks_loss(preds, tgts, src_ids, tgt_ids,
                    use_bbox=False, weight=1.0, eps=1e-5)
    loss = jax.block_until_ready(loss)
    ref = _reference_oks_loss(preds, tgts, src_ids, tgt_ids,
                              use_bbox=False, weight=1.0, eps=1e-5)
    # Tolerance relaxed to 1e-3: approx (EUP) reciprocal + eps factoring.
    assert jnp.allclose(loss, ref, atol=1e-3, rtol=1e-3), (loss, ref)

    # Case 2: mid-size M -> still ONE grid step (bucket 1024 lanes), plus the
    # use_bbox / weight paths.
    preds, tgts, src_ids, tgt_ids = _make_case(B=2, Q=512, K=17, n_tgt=700,
                                               M=600, key=key2)
    loss2 = oks_loss(preds, tgts, src_ids, tgt_ids,
                     use_bbox=True, weight=2.0, eps=1e-5)
    loss2 = jax.block_until_ready(loss2)
    ref2 = _reference_oks_loss(preds, tgts, src_ids, tgt_ids,
                               use_bbox=True, weight=2.0, eps=1e-5)
    assert jnp.allclose(loss2, ref2, atol=2e-3, rtol=2e-3), (loss2, ref2)

    # Case 3: extreme M -> exercises the multi-tile lane-wise accumulator
    # (m_pad = 16384, two 8192-lane grid steps) and padded-lane masking.
    preds, tgts, src_ids, tgt_ids = _make_case(B=2, Q=16, K=17, n_tgt=50,
                                               M=9000, key=key3)
    loss3 = oks_loss(preds, tgts, src_ids, tgt_ids,
                     use_bbox=False, weight=1.0, eps=1e-5)
    loss3 = jax.block_until_ready(loss3)
    ref3 = _reference_oks_loss(preds, tgts, src_ids, tgt_ids,
                               use_bbox=False, weight=1.0, eps=1e-5)
    assert jnp.allclose(loss3, ref3, atol=2e-3, rtol=2e-3), (loss3, ref3)

    print("KERNEL_OK")
</pallas_src>

<mosaic_0001>
module attributes {stable_mosaic.version = 11 : i64} {
  func.func @_oks_loss_kernel(%arg0: i32, %arg1: memref<1xf32, #tpu.memory_space<smem>>, %arg2: memref<5x17x128xf32, #tpu.memory_space<vmem>>, %arg3: memref<1x128xf32, #tpu.memory_space<vmem>>, %arg4: memref<17x1xf32, #tpu.memory_space<vmem>>, %arg5: memref<1xf32, #tpu.memory_space<smem>>, %arg6: memref<1x128xf32, #tpu.memory_space<vmem>>, %arg7: memref<1x1xf32, #tpu.memory_space<vmem>>) attributes {dimension_semantics = [#tpu.dimension_semantics<arbitrary>], iteration_bounds = array<i64: 1>, scalar_prefetch = 0 : i64, scratch_operands = 2 : i64, tpu.core_type = #tpu.core_type<tc>, window_params = [{transform_indices = @transform_0, window_bounds = array<i64: 1>}, {transform_indices = @transform_1, window_bounds = array<i64: 5, 17, 128>}, {transform_indices = @transform_2, window_bounds = array<i64: 1, 128>}, {pipeline_mode = #tpu.pipeline_mode<synchronous>, transform_indices = @transform_3, window_bounds = array<i64: 17, 1>}, {transform_indices = @transform_4, window_bounds = array<i64: 1>}]} {
    %c0_i32 = arith.constant 0 : i32
    %0 = arith.cmpi eq, %arg0, %c0_i32 : i32
    %1 = arith.extui %0 : i1 to i32
    %c0_i32_0 = arith.constant 0 : i32
    %2 = arith.cmpi ne, %1, %c0_i32_0 : i32
    scf.if %2 {
      %cst_25 = arith.constant 0.000000e+00 : f32
      %44 = vector.broadcast %cst_25 : f32 to vector<1x128xf32>
      %c0_26 = arith.constant 0 : index
      %c0_27 = arith.constant 0 : index
      %45 = vector.load %arg6[%c0_26, %c0_27] : memref<1x128xf32, #tpu.memory_space<vmem>>, vector<1x128xf32>
      tpu.vector_store %arg6[%c0_26, %c0_27], %44 {strides = array<i32>} : memref<1x128xf32, #tpu.memory_space<vmem>>, vector<1x128xf32>,
    } else {
    }
    %c0 = arith.constant 0 : index
    %c0_1 = arith.constant 0 : index
    %c0_2 = arith.constant 0 : index
    %3 = vector.load %arg2[%c0, %c0_1, %c0_2] : memref<5x17x128xf32, #tpu.memory_space<vmem>>, vector<1x17x128xf32>
    %4 = vector.shape_cast %3 : vector<1x17x128xf32> to vector<17x128xf32>
    %c1 = arith.constant 1 : index
    %c0_3 = arith.constant 0 : index
    %c0_4 = arith.constant 0 : index
    %5 = vector.load %arg2[%c1, %c0_3, %c0_4] : memref<5x17x128xf32, #tpu.memory_space<vmem>>, vector<1x17x128xf32>
    %6 = vector.shape_cast %5 : vector<1x17x128xf32> to vector<17x128xf32>
    %c2 = arith.constant 2 : index
    %c0_5 = arith.constant 0 : index
    %c0_6 = arith.constant 0 : index
    %7 = vector.load %arg2[%c2, %c0_5, %c0_6] : memref<5x17x128xf32, #tpu.memory_space<vmem>>, vector<1x17x128xf32>
    %8 = vector.shape_cast %7 : vector<1x17x128xf32> to vector<17x128xf32>
    %c3 = arith.constant 3 : index
    %c0_7 = arith.constant 0 : index
    %c0_8 = arith.constant 0 : index
    %9 = vector.load %arg2[%c3, %c0_7, %c0_8] : memref<5x17x128xf32, #tpu.memory_space<vmem>>, vector<1x17x128xf32>
    %10 = vector.shape_cast %9 : vector<1x17x128xf32> to vector<17x128xf32>
    %c4 = arith.constant 4 : index
    %c0_9 = arith.constant 0 : index
    %c0_10 = arith.constant 0 : index
    %11 = vector.load %arg2[%c4, %c0_9, %c0_10] : memref<5x17x128xf32, #tpu.memory_space<vmem>>, vector<1x17x128xf32>
    %12 = vector.shape_cast %11 : vector<1x17x128xf32> to vector<17x128xf32>
    %13 = arith.subf %4, %8 : vector<17x128xf32>
    %14 = arith.subf %6, %10 : vector<17x128xf32>
    %15 = arith.mulf %13, %13 : vector<17x128xf32>
    %16 = arith.mulf %14, %14 : vector<17x128xf32>
    %17 = arith.addf %15, %16 : vector<17x128xf32>
    %c0_11 = arith.constant 0 : index
    %c0_12 = arith.constant 0 : index
    %18 = vector.load %arg3[%c0_11, %c0_12] : memref<1x128xf32, #tpu.memory_space<vmem>>, vector<1x128xf32>
    %cst = arith.constant 9.99999974E-6 : f32
    %19 = vector.broadcast %cst : f32 to vector<1x128xf32>
    %20 = arith.addf %18, %19 : vector<1x128xf32>
    %21 = tpu.reciprocal %20 {approx = true} : vector<1x128xf32> -> vector<1x128xf32>
    %cst_13 = arith.constant 0.000000e+00 : f32
    %22 = vector.broadcast %cst_13 : f32 to vector<17x128xf32>
    %23 = arith.subf %22, %17 : vector<17x128xf32>
    %c0_14 = arith.constant 0 : index
    %c0_15 = arith.constant 0 : index
    %24 = vector.load %arg4[%c0_14, %c0_15] : memref<17x1xf32, #tpu.memory_space<vmem>>, vector<17x1xf32>
    %25 = vector.broadcast %24 : vector<17x1xf32> to vector<17x128xf32>
    %26 = arith.mulf %23, %25 : vector<17x128xf32>
    %27 = vector.broadcast %21 : vector<1x128xf32> to vector<17x128xf32>
    %28 = arith.mulf %26, %27 : vector<17x128xf32>
    %29 = math.exp %28 : vector<17x128xf32>
    %30 = arith.mulf %29, %12 : vector<17x128xf32>
    %cst_16 = arith.constant dense<0.000000e+00> : vector<128xf32>
    %31 = vector.multi_reduction <add>, %30, %cst_16 [0] : vector<17x128xf32> to vector<128xf32>
    %32 = vector.shape_cast %31 : vector<128xf32> to vector<1x128xf32>
    %cst_17 = arith.constant dense<0.000000e+00> : vector<128xf32>
    %33 = vector.multi_reduction <add>, %12, %cst_17 [0] : vector<17x128xf32> to vector<128xf32>
    %34 = vector.shape_cast %33 : vector<128xf32> to vector<1x128xf32>
    %cst_18 = arith.constant 9.99999974E-6 : f32
    %35 = vector.broadcast %cst_18 : f32 to vector<1x128xf32>
    %36 = arith.addf %34, %35 : vector<1x128xf32>
    %c0_19 = arith.constant 0 : index
    %c0_20 = arith.constant 0 : index
    %37 = vector.load %arg6[%c0_19, %c0_20] : memref<1x128xf32, #tpu.memory_space<vmem>>, vector<1x128xf32>
    %38 = arith.divf %32, %36 : vector<1x128xf32>
    %39 = arith.addf %37, %38 : vector<1x128xf32>
    %c0_21 = arith.constant 0 : index
    %c0_22 = arith.constant 0 : index
    %40 = vector.load %arg6[%c0_21, %c0_22] : memref<1x128xf32, #tpu.memory_space<vmem>>, vector<1x128xf32>
    tpu.vector_store %arg6[%c0_21, %c0_22], %39 {strides = array<i32>} : memref<1x128xf32, #tpu.memory_space<vmem>>, vector<1x128xf32>,
    %c0_i32_23 = arith.constant 0 : i32
    %41 = arith.cmpi eq, %arg0, %c0_i32_23 : i32
    %42 = arith.extui %41 : i1 to i32
    %c0_i32_24 = arith.constant 0 : i32
    %43 = arith.cmpi ne, %42, %c0_i32_24 : i32
    scf.if %43 {
      %c0_25 = arith.constant 0 : index
      %c0_26 = arith.constant 0 : index
      %44 = vector.load %arg6[%c0_25, %c0_26] : memref<1x128xf32, #tpu.memory_space<vmem>>, vector<1x128xf32>
      %cst_27 = arith.constant dense<0.000000e+00> : vector<1xf32>
      %45 = vector.multi_reduction <add>, %44, %cst_27 [1] : vector<1x128xf32> to vector<1xf32>
      %46 = vector.shape_cast %45 : vector<1xf32> to vector<1x1xf32>
      %c0_28 = arith.constant 0 : index
      %47 = memref.load %arg1[%c0_28] : memref<1xf32, #tpu.memory_space<smem>>
      %48 = vector.broadcast %47 : f32 to vector<1x1xf32>
      %49 = arith.mulf %46, %48 : vector<1x1xf32>
      %cst_29 = arith.constant 1.000000e+00 : f32
      %50 = vector.broadcast %cst_29 : f32 to vector<1x1xf32>
      %51 = arith.subf %50, %49 : vector<1x1xf32>
      %cst_30 = arith.constant 1.000000e+00 : f32
      %52 = vector.broadcast %cst_30 : f32 to vector<1x1xf32>
      %53 = arith.mulf %51, %52 : vector<1x1xf32>
      %c0_31 = arith.constant 0 : index
      %c0_32 = arith.constant 0 : index
      %54 = vector.load %arg7[%c0_31, %c0_32] : memref<1x1xf32, #tpu.memory_space<vmem>>, vector<1x1xf32>
      tpu.vector_store %arg7[%c0_31, %c0_32], %53 {strides = array<i32>} : memref<1x1xf32, #tpu.memory_space<vmem>>, vector<1x1xf32>,
      %c0_33 = arith.constant 0 : index
      %c0_34 = arith.constant 0 : index
      %55 = vector.load %arg7[%c0_33, %c0_34] : memref<1x1xf32, #tpu.memory_space<vmem>>, vector<1x1xf32>
      %56 = vector.extract %55[0, 0] : f32 from vector<1x1xf32>
      %c0_35 = arith.constant 0 : index
      %57 = memref.load %arg5[%c0_35] : memref<1xf32, #tpu.memory_space<smem>>
      memref.store %56, %arg5[%c0_35] : memref<1xf32, #tpu.memory_space<smem>>
    } else {
    }
    return
  }
  func.func @transform_0(%arg0: i32) -> i32 {
    %c0_i32 = arith.constant 0 : i32
    %c0_i32_0 = arith.constant 0 : i32
    return %c0_i32 : i32
  }
  func.func @transform_1(%arg0: i32) -> (i32, i32, i32) {
    %c0_i32 = arith.constant 0 : i32
    %c0_i32_0 = arith.constant 0 : i32
    %c0_i32_1 = arith.constant 0 : i32
    return %c0_i32, %c0_i32_0, %arg0 : i32, i32, i32
  }
  func.func @transform_2(%arg0: i32) -> (i32, i32) {
    %c0_i32 = arith.constant 0 : i32
    %c0_i32_0 = arith.constant 0 : i32
    return %c0_i32, %arg0 : i32, i32
  }
  func.func @transform_3(%arg0: i32) -> (i32, i32) {
    %c0_i32 = arith.constant 0 : i32
    %c0_i32_0 = arith.constant 0 : i32
    %c0_i32_1 = arith.constant 0 : i32
    return %c0_i32, %c0_i32_0 : i32, i32
  }
  func.func @transform_4(%arg0: i32) -> i32 {
    %c0_i32 = arith.constant 0 : i32
    %c0_i32_0 = arith.constant 0 : i32
    return %c0_i32 : i32
  }
}

</mosaic_0001>

<bundles_post_ra>
// kernel: tpu_custom_call.1
= control target key start
LH: loop header
LB: loop body
LE: loop exit
PB: predicated region body
PF: predicated region fallthrough
CT: control target
= control target key end

     0   :  { %10 = vsyncpa [#allocation6], 0  ;;  %s314_s0 = inlined_call_operand.<no memory space> [shape: f32[1], index: 0, kind: input, shape index: {}]   ;;  %s315_s1 = inlined_call_operand.hbm [shape: f32[5,17,128], index: 1, kind: input, shape index: {}]   ;;  %s316_s2 = inlined_call_operand.vmem [shape: f32[1,128], index: 2, kind: input, shape index: {}]   ;;  %s317_s3 = inlined_call_operand.vmem [shape: f32[17,1], index: 3, kind: input, shape index: {}]   ;;  %s318_s4 = inlined_call_operand.hbm [shape: f32[1], index: 4, kind: output, shape index: {}]  }
   0x1   :  { %11 = vsyncpa [#allocation7], 0  ;;  %s18_s17 = sshll.u32 %s315_s1, 4  ;;  %s247_s18 = smov [#allocation5]   ;;  %s19_s17 = int_to_ptr.hbm [resolvable:$true] %s18_s17 }
   0x2   :  { %s20_s19 = sshll.u32 %s247_s18, 4  ;;  %s248_s20 = smov 128   ;;  %s21_s19 = int_to_ptr.vmem [resolvable:$true] %s20_s19 }
   0x3   :  { %s249_s21 = smov 8  }
   0x4   :  { %26 = dma.hbm_to_vmem [thread:$0]  %s19_s17, 1920, %s21_s19, [#allocation6], %s248_s20, %s248_s20, %s249_s21  }
   0x5   :  { %243 = dma.done.wait [#allocation6], 1920  }
   0x6   :  { %244 = vsyncadd [#allocation6], 4294965376  ;;  %v250_v0 = vmov 0   ;;  %v80_v1 = vld [vmem:[%s317_s3] sm:$0xff]  ;;  %v82_v2 = vld [vmem:[%s317_s3 + $0x10] sm:$0x1] }
   0x7   :  { %195 = vset.pattern.permute.xlu0 %v250_v0  ;;  %196 = vset.pattern.permute.xlu1 %v250_v0  ;;  %v81_v3 = vld [vmem:[%s317_s3 + $0x8] sm:$0xff]  ;;  %v294_v6 = vld [vmem:[#allocation5 + $0x70] sm:$0x1]  ;;  %vm117_vm0 = vcmask 1040384   ;;  %v44_v11 = vld [vmem:[#allocation5 + $0x18] sm:$0xff]  ;;  %v251_v22 = vmov 0.0  }
   0x8   :  { %85 = vperm.xlu0 %195, %v80_v1   ;;  %95 = vperm.xlu1 %196, %v82_v2   ;;  %v290_v4 = vld [vmem:[#allocation5 + $0x60] sm:$0xff]  ;;  %v292_v5 = vld [vmem:[#allocation5 + $0x68] sm:$0xff]  ;;  %v127_v8 = vsel %vm117_vm0, %v294_v6, 0.0  ;;  %v48_v12 = vld [vmem:[#allocation5 + $0x30] sm:$0xff]  ;;  %39 = vst [vmem:[#allocation2] sm:$0x1] %v251_v22 }
   0x9   :  { %v126_v7 = vadd.f32 %v292_v5, %v290_v4  ;;  %v40_v10 = vld [vmem:[#allocation5] sm:$0xff]  ;;  %v52_v13 = vld [vmem:[#allocation5 + $0x48] sm:$0xff]  ;;  %v42_v14 = vld [vmem:[#allocation5 + $0x10] sm:$0x1]  ;;  %vm165_vm5 = vcmask 0   ;;  %s176_s5 = sshll.u32 %s318_s4, 4  ;;  %s177_s5 = int_to_ptr.hbm [resolvable:$true] %s176_s5 }
   0xa   :  { %v46_v16 = vld [vmem:[#allocation5 + $0x28] sm:$0x1]  ;;  %v50_v17 = vld [vmem:[#allocation5 + $0x40] sm:$0x1]  ;;  %v54_v18 = vld [vmem:[#allocation5 + $0x58] sm:$0x1]  ;;  %v59_v19 = vsub.f32 %v40_v10, %v48_v12  ;;  %v62_v20 = vsub.f32 %v44_v11, %v52_v13 }
   0xb   :  { %v128_v9 = vadd.f32 %v127_v8, %v126_v7  ;;  %v74_v21 = vld [vmem:[%s316_s2] sm:$0x1]  ;;  %v61_v23 = vsub.f32 %v42_v14, %v50_v17  ;;  %v64_v24 = vsub.f32 %v46_v16, %v54_v18  ;;  %v41_v29 = vld [vmem:[#allocation5 + $0x8] sm:$0xff]  ;;  %v45_v33 = vld [vmem:[#allocation5 + $0x20] sm:$0xff]  ;;  %s252_s7 = smov [#allocation8]  }
   0xc   :  { %v75_v26 = vadd.f32 1e-05, %v74_v21  ;;  %v65_v27 = vmul.f32 %v59_v19, %v59_v19  ;;  %v68_v28 = vmul.f32 %v62_v20, %v62_v20  ;;  %v49_v34 = vld [vmem:[#allocation5 + $0x38] sm:$0xff]  ;;  %v53_v35 = vld [vmem:[#allocation5 + $0x50] sm:$0xff] }
   0xd   :  { %v129_v15 = vrot.slane %v128_v9, 4  ;;  %v67_v30 = vmul.f32 %v61_v23, %v61_v23  ;;  %v70_v31 = vmul.f32 %v64_v24, %v64_v24  ;;  %v60_v37 = vsub.f32 %v41_v29, %v49_v34 }
   0xe   :  { %197 = vrcp.f32 %v75_v26  ;;  %v71_v36 = vadd.f32 %v68_v28, %v65_v27  ;;  %v63_v38 = vsub.f32 %v45_v33, %v53_v35 }
   0xf   :  { %v130_v25 = vadd.f32 %v129_v15, %v128_v9  ;;  %v73_v39 = vadd.f32 %v70_v31, %v67_v30  ;;  %v66_v43 = vmul.f32 %v60_v37, %v60_v37  ;;  %v162_v30 = vstv %s314_s0 }
  0x10   :  { %90 = vperm.xlu0 %195, %v81_v3   ;;  %v77_v41 = vsub.f32 0.0, %v71_v36  ;;  %v69_v44 = vmul.f32 %v63_v38, %v63_v38 }
  0x11   :  { %v131_v32 = vrot.slane %v130_v25, 2  ;;  %v79_v45 = vsub.f32 0.0, %v73_v39 }
  0x12   :  { %v72_v51 = vadd.f32 %v69_v44, %v66_v43 }
  0x13   :  { %v132_v40 = vadd.f32 %v131_v32, %v130_v25  ;;  %v136_v25 = vld [vmem:[#allocation2] sm:$0x1] }
  0x14   :  { %v198_v42 = vpop.eup %197  ;;  %v78_v56 = vsub.f32 0.0, %v72_v51 }
  0x15   :  { %v133_v46 = vrot.slane %v132_v40, 1  ;;  %v102_v48 = vperm.slane %v198_v42, 0 }
  0x17   :  { %v134_v53 = vadd.f32 %v133_v46, %v132_v40 }
  0x19   :  { %v135_v57 = vadd.f32 1e-05, %v134_v53 }
  0x1b   :  { %199 = vrcp.f32 %v135_v57  ;;  %vm142_vm1 = vweird.f32 %v135_v57  ;;  %v148_v17 = vand.u32 2147483648, %v135_v57  ;;  %v146_v20 = vand.u32 2147483647, %v135_v57 }
  0x1d   :  { %v149_v21 = vor.u32 1.1754944e-38, %v148_v17  ;;  %vm147_vm4 = vcmp.eq.f32.partialorder %v146_v20, 8.507059e+37 }
  0x21   :  { %v200_v0 = vpop.eup %199 }
  0x22   :  { %v138_v2 = vmul.f32 %v200_v0, %v135_v57  ;;  %vm143_vm2 = vweird.f32 %v200_v0 }
  0x23   :  { %vm144_vm3 = vmor %vm142_vm1, %vm143_vm2 }
  0x24   :  { %v139_v11 = vsub.f32 1.0, %v138_v2 }
  0x26   :  { %v140_v15 = vmul.f32 %v200_v0, %v139_v11 }
  0x28   :  { %v141_v19 = vadd.f32 %v200_v0, %v140_v15 }
  0x7a   :  { %v86_v47 = vpop.permute.xlu0 %85  ;;  %v96_v49 = vpop.permute.xlu1 %95 }
  0x7b   :  { %v98_v50 = vmul.f32 %v86_v47, %v77_v41  ;;  %v100_v52 = vmul.f32 %v96_v49, %v79_v45 }
  0x7d   :  { %v106_v54 = vmul.f32 %v102_v48, %v100_v52  ;;  %v104_v55 = vmul.f32 %v102_v48, %v98_v50 }
  0x7f   :  { %v111_v58 = vmul.f32 1.442695, %v106_v54  ;;  %v107_v60 = vmul.f32 1.442695, %v104_v55 }
  0x81   :  { %201 = vpow2.f32 %v111_v58 }
  0x82   :  { %v91_v59 = vpop.permute.xlu0 %90  ;;  %203 = vpow2.f32 %v107_v60 }
  0x83   :  { %v99_v61 = vmul.f32 %v91_v59, %v78_v56 }
  0x85   :  { %v105_v62 = vmul.f32 %v102_v48, %v99_v61 }
  0x87   :  { %v109_v63 = vmul.f32 1.442695, %v105_v62  ;;  %v202_v1 = vpop.eup %201 }
  0x88   :  { %v204_v3 = vpop.eup %203  ;;  %v115_v7 = vmul.f32 %v202_v1, %v294_v6 }
  0x89   :  { %205 = vpow2.f32 %v109_v63  ;;  %v113_v9 = vmul.f32 %v204_v3, %v290_v4  ;;  %v145_v4 = vsel %vm144_vm3, %v200_v0, %v141_v19 }
  0x8a   :  { %v118_v12 = vsel %vm117_vm0, %v115_v7, 0.0  ;;  %v150_v23 = vsel %vm147_vm4, %v149_v21, %v145_v4 }
  0x8f   :  { %v206_v8 = vpop.eup %205 }
  0x90   :  { %v114_v10 = vmul.f32 %v206_v8, %v292_v5 }
  0x92   :  { %v116_v13 = vadd.f32 %v114_v10, %v113_v9 }
  0x94   :  { %v119_v14 = vadd.f32 %v118_v12, %v116_v13 }
  0x96   :  { %v120_v16 = vrot.slane %v119_v14, 4 }
  0x98   :  { %v121_v18 = vadd.f32 %v120_v16, %v119_v14 }
  0x9a   :  { %v122_v6 = vrot.slane %v121_v18, 2 }
  0x9c   :  { %v123_v22 = vadd.f32 %v122_v6, %v121_v18 }
  0x9e   :  { %v124_v5 = vrot.slane %v123_v22, 1 }
  0xa0   :  { %v125_v24 = vadd.f32 %v124_v5, %v123_v22 }
  0xa2   :  { %v151_v26 = vmul.f32 %v150_v23, %v125_v24 }
  0xa4   :  { %v152_v27 = vadd.f32 %v151_v26, %v136_v25 }
  0xa6   :  { %153 = vst [vmem:[#allocation2] sm:$0x1] %v152_v27 }
  0xad   :  { %v157_v28 = vld [vmem:[#allocation2] sm:$0x1] }
  0xae   :  { %v158_v29 = vsel %vm117_vm0, %v157_v28, 0.0 }
  0xaf   :  { %159 = vadd.xlane.f32.xlu1 %v158_v29 }
 0x122   :  { %v160_v31 = vpop.xlane.xlu1 %159 }
 0x123   :  { %v163_v32 = vmul.f32 %v162_v30, %v160_v31 }
 0x125   :  { %v164_v33 = vsub.f32 1.0, %v163_v32 }
 0x127   :  { %166 = vst.msk [vmem:[#allocation3] sm:$0x1] %vm165_vm5, %v164_v33 }
 0x12e   :  { %v167_v34 = vld [vmem:[#allocation3] sm:$0x1] }
 0x12f   :  { %187 = vpush %v167_v34 }
 0x160   :  { %s188_s6 = spop %187 }
 0x161   :  { %170 = sst [smem:[#allocation8]] %s188_s6 }
 0x162   :  { %179 = dma.smem_to_hbm %s252_s7, 16, %s177_s5, [#allocation7]  }
 0x163   :  { %245 = dma.done.wait [#allocation7], 16  }
 0x164   :  { %246 = vsyncadd [#allocation7], 4294967280 }
 0x165   :  { %184 = sfence }
 0x166   :  { %185 = vsyncpa [#allocation6], 1 }
 0x167   :  { %186 = vsyncpa [#allocation7], 1 }

</bundles_post_ra>
